<compile_context>
chip_gen: v6e
topology: v6e:2x2x1
jax: 0.10.0
libtpu: 0.0.40
codegen_flags: <defaults>
</compile_context>

<pallas_src>
import functools

import jax
import jax.numpy as jnp
from jax import lax
from jax.experimental import pallas as pl
from jax.experimental.pallas import tpu as pltpu

ALPHA = 0.25        # FocalLoss defaults
GAMMA = 2.0
LANES = 128
SUBLANES = 8
MAX_TILE_ROWS = 2048   # 2048 * 128 * 4 B = 1 MiB per f32 input block


def _focal_iou_kernel(pred_ref, tgt_ref, out_ref, *,
                      tile_rows, n_valid, chunks_per_split, full_chunks,
                      any_masked):
    """Accumulate per-(image, split) partial sums into a resident (1,4,8,128) block.

    out_ref slots along axis 1: 0 = sum(bce), 1 = sum(x*z), 2 = sum(x), 3 = sum(z).
    """
    s = pl.program_id(1)            # megacore split of the chunk range
    c = pl.program_id(2)            # chunk within the split (reduction axis)
    gc = s * chunks_per_split + c   # global chunk index
    ce = tile_rows * LANES          # elements per chunk

    @pl.when(c == 0)
    def _():
        out_ref[...] = jnp.zeros_like(out_ref)

    def fold(v):
        # Fold rows into a single (8, 128) vreg with pure VPU adds
        # (leading-axis split keeps the (8,128) tile layout -> no XLU work).
        return jnp.sum(v.reshape(tile_rows // SUBLANES, SUBLANES, LANES), axis=0)

    def accumulate(mask_tail):
        # In-kernel cast: callers may ship target as int8 / pred as bf16 to cut
        # HBM bytes; all accumulation stays in f32.
        x = pred_ref[0].astype(jnp.float32)
        z = tgt_ref[0].astype(jnp.float32)
        if mask_tail:
            idx = (gc * ce
                   + lax.broadcasted_iota(jnp.int32, (tile_rows, LANES), 0) * LANES
                   + lax.broadcasted_iota(jnp.int32, (tile_rows, LANES), 1))
            valid = idx < n_valid
            x = jnp.where(valid, x, 0.0)
            z = jnp.where(valid, z, 0.0)
        xz = x * z
        # BCEWithLogitsLoss elementwise (numerically stable PyTorch form):
        #   max(x, 0) - x*z + log(1 + exp(-|x|))
        bce = jnp.maximum(x, 0.0) - xz + jnp.log1p(jnp.exp(-jnp.abs(x)))
        if mask_tail:
            bce = jnp.where(valid, bce, 0.0)   # bce(0,0) = log(2): must be masked
        # TODO(synk): on v7x, if the bundle dump shows VALU saturation, offload
        # these folds to the MXU (ones(8, tile_rows) @ v, f32 accumulation).
        out_ref[0, 0] = out_ref[0, 0] + fold(bce)
        out_ref[0, 1] = out_ref[0, 1] + fold(xz)
        out_ref[0, 2] = out_ref[0, 2] + fold(x)
        out_ref[0, 3] = out_ref[0, 3] + fold(z)

    if not any_masked:
        accumulate(False)
    else:
        # Hot path: fully-valid chunks run with zero masking overhead.
        @pl.when(gc < full_chunks)
        def _():
            accumulate(False)

        # Cold path (at most the final partial chunk + one padding chunk per
        # split): mask every element index >= n_valid exactly.
        @pl.when(gc >= full_chunks)
        def _():
            accumulate(True)


def focal_iou(pred, target, theta, *, alpha=ALPHA, gamma=GAMMA):
    B, C, H, W = pred.shape
    n = C * H * W

    rows = pl.cdiv(n, LANES)

    # Lane-dense flattening of the per-image axis.  When n is a multiple of
    # 128 this reshape is free (no HBM copy, no cast); otherwise pad minimally
    # to the next multiple of 128 (tail values are masked in-kernel anyway).
    # TODO(synk): avoid the pad copy for n % 128 != 0 via manual DMA from the
    # flat layout (memory_space=pl.ANY).
    def prep(a):
        a = a.reshape(B, n)
        if n % LANES:
            a = jnp.pad(a, ((0, 0), (0, rows * LANES - n)))
        return a.reshape(B, rows, LANES)

    p = prep(pred)
    t = prep(target)

    tile_rows = min(MAX_TILE_ROWS, pl.cdiv(rows, SUBLANES) * SUBLANES)
    n_chunks = pl.cdiv(rows, tile_rows)
    ce = tile_rows * LANES

    # Split the chunk range across two parallel grid slots so both v7x
    # TensorCores have work even when B == 1 (~neutral on v5e/v6e, 1 TC).
    nsplit = 2 if n_chunks >= 2 else 1
    chunks_per_split = pl.cdiv(n_chunks, nsplit)
    total_chunks = nsplit * chunks_per_split
    full_chunks = n // ce                       # chunks needing no tail mask
    any_masked = (total_chunks * ce) != n

    out_bytes = B * nsplit * 4 * SUBLANES * LANES * 4
    cost = pl.CostEstimate(
        flops=int(12 * B * n),
        transcendentals=int(2 * B * n),
        bytes_accessed=int(p.size * p.dtype.itemsize
                           + t.size * t.dtype.itemsize + out_bytes))

    kernel = functools.partial(
        _focal_iou_kernel, tile_rows=tile_rows, n_valid=n,
        chunks_per_split=chunks_per_split, full_chunks=full_chunks,
        any_masked=any_masked)

    partials = pl.pallas_call(
        kernel,
        out_shape=jax.ShapeDtypeStruct((B * nsplit, 4, SUBLANES, LANES),
                                       jnp.float32),
        grid=(B, nsplit, chunks_per_split),
        in_specs=[
            pl.BlockSpec((1, tile_rows, LANES),
                         lambda b, s, c: (b, s * chunks_per_split + c, 0)),
            pl.BlockSpec((1, tile_rows, LANES),
                         lambda b, s, c: (b, s * chunks_per_split + c, 0)),
        ],
        out_specs=pl.BlockSpec((1, 4, SUBLANES, LANES),
                               lambda b, s, c: (b * nsplit + s, 0, 0, 0)),
        compiler_params=pltpu.CompilerParams(
            dimension_semantics=("parallel", "parallel", "arbitrary")),
        cost_estimate=cost,
        # NOTE: 1 MiB blocks x 2 inputs x 2 pipeline buffers = 4 MiB fits every
        # generation's scoped-VMEM default; add pipeline_mode=pl.Buffered(3)
        # on in_specs only if profiling shows exposed DMA.
    )(p, t)

    # (B*nsplit, 4, 8, 128) -> per-image sums (B, 4): [bce, x*z, x, z]
    sums = partials.sum(axis=(2, 3)).reshape(B, nsplit, 4).sum(axis=1)

    bce_mean = jnp.sum(sums[:, 0]) / (B * n)    # BCEWithLogitsLoss (mean)
    logpt = -bce_mean
    pt = jnp.exp(logpt)
    focal = -((1.0 - pt) ** gamma) * alpha * logpt

    # IoU_loss uses raw logits (no sigmoid), exactly like the PyTorch module;
    # ior + 1e-5 may pass near zero for adversarial inputs (matches reference).
    iand = sums[:, 1]
    ior = sums[:, 3] + sums[:, 2] - iand
    iou = jnp.mean(1.0 - iand / (ior + 1e-5))

    return theta * focal + (1.0 - theta) * iou


def _reference(pred, target, theta):
    """Pure-JAX reference matching the PyTorch module semantics."""
    x = pred.astype(jnp.float32)
    z = target.astype(jnp.float32)
    bce = jnp.mean(jnp.maximum(x, 0.0) - x * z + jnp.log1p(jnp.exp(-jnp.abs(x))))
    logpt = -bce
    pt = jnp.exp(logpt)
    focal = -((1.0 - pt) ** GAMMA) * ALPHA * logpt

    iand = jnp.sum(x * z, axis=(1, 2, 3))
    ior = jnp.sum(z, axis=(1, 2, 3)) + jnp.sum(x, axis=(1, 2, 3)) - iand
    iou = jnp.mean(1.0 - iand / (ior + 1e-5))
    return theta * focal + (1.0 - theta) * iou


if __name__ == "__main__":
    THETA = 0.7  # module hyper-parameter, chosen deterministically in-script

    key = jax.random.PRNGKey(0)
    k1, k2 = jax.random.split(key)
    B, C, H, W = 2, 4, 16, 16
    pred = jax.random.normal(k1, (B, C, H, W), dtype=jnp.float32)
    target = jax.random.bernoulli(k2, 0.5, (B, C, H, W)).astype(jnp.float32)

    loss = jax.block_until_ready(focal_iou(pred, target, THETA))
    ref = jax.block_until_ready(_reference(pred, target, THETA))
    assert jnp.allclose(loss, ref, rtol=1e-5, atol=1e-5), (loss, ref)

    # Extra correctness checks: (a) n % 128 != 0 exercises the masked tail,
    # (b) a larger image exercises the multi-chunk + megacore-split path.
    for shape in ((2, 3, 17, 19), (1, 3, 320, 320)):
        k1, k2, key = jax.random.split(key, 3)
        p2 = jax.random.normal(k1, shape, dtype=jnp.float32)
        t2 = jax.random.bernoulli(k2, 0.5, shape).astype(jnp.float32)
        l2 = jax.block_until_ready(focal_iou(p2, t2, THETA))
        r2 = jax.block_until_ready(_reference(p2, t2, THETA))
        assert jnp.allclose(l2, r2, rtol=1e-5, atol=1e-5), (shape, l2, r2)

    print("KERNEL_OK")
</pallas_src>

<mosaic_0001>
module attributes {stable_mosaic.version = 11 : i64} {
  func.func @_focal_iou_kernel(%arg0: i32, %arg1: i32, %arg2: i32, %arg3: memref<1x8x128xf32, #tpu.memory_space<vmem>>, %arg4: memref<1x8x128xf32, #tpu.memory_space<vmem>>, %arg5: memref<1x4x8x128xf32, #tpu.memory_space<vmem>>) attributes {dimension_semantics = [#tpu.dimension_semantics<parallel>, #tpu.dimension_semantics<parallel>, #tpu.dimension_semantics<arbitrary>], iteration_bounds = array<i64: 2, 1, 1>, scalar_prefetch = 0 : i64, scratch_operands = 0 : i64, tpu.core_type = #tpu.core_type<tc>, window_params = [{transform_indices = @transform_0, window_bounds = array<i64: 1, 8, 128>}, {transform_indices = @transform_1, window_bounds = array<i64: 1, 8, 128>}, {transform_indices = @transform_2, window_bounds = array<i64: 1, 4, 8, 128>}]} {
    %c0_i32 = arith.constant 0 : i32
    %0 = arith.cmpi eq, %arg2, %c0_i32 : i32
    %1 = arith.extui %0 : i1 to i32
    %c0_i32_0 = arith.constant 0 : i32
    %2 = arith.cmpi ne, %1, %c0_i32_0 : i32
    scf.if %2 {
      %cst_40 = arith.constant 0.000000e+00 : f32
      %49 = vector.broadcast %cst_40 : f32 to vector<1x4x8x128xf32>
      %c0_41 = arith.constant 0 : index
      %c0_42 = arith.constant 0 : index
      %c0_43 = arith.constant 0 : index
      %c0_44 = arith.constant 0 : index
      %50 = vector.load %arg5[%c0_41, %c0_42, %c0_43, %c0_44] : memref<1x4x8x128xf32, #tpu.memory_space<vmem>>, vector<1x4x8x128xf32>
      tpu.vector_store %arg5[%c0_41, %c0_42, %c0_43, %c0_44], %49 {strides = array<i32>} : memref<1x4x8x128xf32, #tpu.memory_space<vmem>>, vector<1x4x8x128xf32>,
    } else {
    }
    %c0 = arith.constant 0 : index
    %c0_1 = arith.constant 0 : index
    %c0_2 = arith.constant 0 : index
    %3 = vector.load %arg3[%c0, %c0_1, %c0_2] : memref<1x8x128xf32, #tpu.memory_space<vmem>>, vector<1x8x128xf32>
    %4 = vector.shape_cast %3 : vector<1x8x128xf32> to vector<8x128xf32>
    %c0_3 = arith.constant 0 : index
    %c0_4 = arith.constant 0 : index
    %c0_5 = arith.constant 0 : index
    %5 = vector.load %arg4[%c0_3, %c0_4, %c0_5] : memref<1x8x128xf32, #tpu.memory_space<vmem>>, vector<1x8x128xf32>
    %6 = vector.shape_cast %5 : vector<1x8x128xf32> to vector<8x128xf32>
    %7 = arith.mulf %4, %6 : vector<8x128xf32>
    %cst = arith.constant 0.000000e+00 : f32
    %8 = vector.broadcast %cst : f32 to vector<8x128xf32>
    %9 = arith.maximumf %4, %8 : vector<8x128xf32>
    %10 = arith.subf %9, %7 : vector<8x128xf32>
    %11 = math.absf %4 : vector<8x128xf32>
    %cst_6 = arith.constant 0.000000e+00 : f32
    %12 = vector.broadcast %cst_6 : f32 to vector<8x128xf32>
    %13 = arith.subf %12, %11 : vector<8x128xf32>
    %14 = math.exp %13 : vector<8x128xf32>
    %15 = math.log1p %14 : vector<8x128xf32>
    %16 = arith.addf %10, %15 : vector<8x128xf32>
    %c0_7 = arith.constant 0 : index
    %c0_8 = arith.constant 0 : index
    %c0_9 = arith.constant 0 : index
    %c0_10 = arith.constant 0 : index
    %17 = vector.load %arg5[%c0_7, %c0_8, %c0_9, %c0_10] : memref<1x4x8x128xf32, #tpu.memory_space<vmem>>, vector<1x1x8x128xf32>
    %18 = vector.shape_cast %17 : vector<1x1x8x128xf32> to vector<8x128xf32>
    %19 = vector.shape_cast %16 : vector<8x128xf32> to vector<1x8x128xf32>
    %cst_11 = arith.constant dense<0.000000e+00> : vector<8x128xf32>
    %20 = vector.multi_reduction <add>, %19, %cst_11 [0] : vector<1x8x128xf32> to vector<8x128xf32>
    %21 = arith.addf %18, %20 : vector<8x128xf32>
    %c0_12 = arith.constant 0 : index
    %c0_13 = arith.constant 0 : index
    %c0_14 = arith.constant 0 : index
    %c0_15 = arith.constant 0 : index
    %22 = vector.load %arg5[%c0_12, %c0_13, %c0_14, %c0_15] : memref<1x4x8x128xf32, #tpu.memory_space<vmem>>, vector<1x1x8x128xf32>
    %23 = vector.shape_cast %22 : vector<1x1x8x128xf32> to vector<8x128xf32>
    %24 = vector.shape_cast %21 : vector<8x128xf32> to vector<1x1x8x128xf32>
    tpu.vector_store %arg5[%c0_12, %c0_13, %c0_14, %c0_15], %24 {strides = array<i32>} : memref<1x4x8x128xf32, #tpu.memory_space<vmem>>, vector<1x1x8x128xf32>,
    %c0_16 = arith.constant 0 : index
    %c1 = arith.constant 1 : index
    %c0_17 = arith.constant 0 : index
    %c0_18 = arith.constant 0 : index
    %25 = vector.load %arg5[%c0_16, %c1, %c0_17, %c0_18] : memref<1x4x8x128xf32, #tpu.memory_space<vmem>>, vector<1x1x8x128xf32>
    %26 = vector.shape_cast %25 : vector<1x1x8x128xf32> to vector<8x128xf32>
    %27 = vector.shape_cast %7 : vector<8x128xf32> to vector<1x8x128xf32>
    %cst_19 = arith.constant dense<0.000000e+00> : vector<8x128xf32>
    %28 = vector.multi_reduction <add>, %27, %cst_19 [0] : vector<1x8x128xf32> to vector<8x128xf32>
    %29 = arith.addf %26, %28 : vector<8x128xf32>
    %c0_20 = arith.constant 0 : index
    %c1_21 = arith.constant 1 : index
    %c0_22 = arith.constant 0 : index
    %c0_23 = arith.constant 0 : index
    %30 = vector.load %arg5[%c0_20, %c1_21, %c0_22, %c0_23] : memref<1x4x8x128xf32, #tpu.memory_space<vmem>>, vector<1x1x8x128xf32>
    %31 = vector.shape_cast %30 : vector<1x1x8x128xf32> to vector<8x128xf32>
    %32 = vector.shape_cast %29 : vector<8x128xf32> to vector<1x1x8x128xf32>
    tpu.vector_store %arg5[%c0_20, %c1_21, %c0_22, %c0_23], %32 {strides = array<i32>} : memref<1x4x8x128xf32, #tpu.memory_space<vmem>>, vector<1x1x8x128xf32>,
    %c0_24 = arith.constant 0 : index
    %c2 = arith.constant 2 : index
    %c0_25 = arith.constant 0 : index
    %c0_26 = arith.constant 0 : index
    %33 = vector.load %arg5[%c0_24, %c2, %c0_25, %c0_26] : memref<1x4x8x128xf32, #tpu.memory_space<vmem>>, vector<1x1x8x128xf32>
    %34 = vector.shape_cast %33 : vector<1x1x8x128xf32> to vector<8x128xf32>
    %35 = vector.shape_cast %4 : vector<8x128xf32> to vector<1x8x128xf32>
    %cst_27 = arith.constant dense<0.000000e+00> : vector<8x128xf32>
    %36 = vector.multi_reduction <add>, %35, %cst_27 [0] : vector<1x8x128xf32> to vector<8x128xf32>
    %37 = arith.addf %34, %36 : vector<8x128xf32>
    %c0_28 = arith.constant 0 : index
    %c2_29 = arith.constant 2 : index
    %c0_30 = arith.constant 0 : index
    %c0_31 = arith.constant 0 : index
    %38 = vector.load %arg5[%c0_28, %c2_29, %c0_30, %c0_31] : memref<1x4x8x128xf32, #tpu.memory_space<vmem>>, vector<1x1x8x128xf32>
    %39 = vector.shape_cast %38 : vector<1x1x8x128xf32> to vector<8x128xf32>
    %40 = vector.shape_cast %37 : vector<8x128xf32> to vector<1x1x8x128xf32>
    tpu.vector_store %arg5[%c0_28, %c2_29, %c0_30, %c0_31], %40 {strides = array<i32>} : memref<1x4x8x128xf32, #tpu.memory_space<vmem>>, vector<1x1x8x128xf32>,
    %c0_32 = arith.constant 0 : index
    %c3 = arith.constant 3 : index
    %c0_33 = arith.constant 0 : index
    %c0_34 = arith.constant 0 : index
    %41 = vector.load %arg5[%c0_32, %c3, %c0_33, %c0_34] : memref<1x4x8x128xf32, #tpu.memory_space<vmem>>, vector<1x1x8x128xf32>
    %42 = vector.shape_cast %41 : vector<1x1x8x128xf32> to vector<8x128xf32>
    %43 = vector.shape_cast %6 : vector<8x128xf32> to vector<1x8x128xf32>
    %cst_35 = arith.constant dense<0.000000e+00> : vector<8x128xf32>
    %44 = vector.multi_reduction <add>, %43, %cst_35 [0] : vector<1x8x128xf32> to vector<8x128xf32>
    %45 = arith.addf %42, %44 : vector<8x128xf32>
    %c0_36 = arith.constant 0 : index
    %c3_37 = arith.constant 3 : index
    %c0_38 = arith.constant 0 : index
    %c0_39 = arith.constant 0 : index
    %46 = vector.load %arg5[%c0_36, %c3_37, %c0_38, %c0_39] : memref<1x4x8x128xf32, #tpu.memory_space<vmem>>, vector<1x1x8x128xf32>
    %47 = vector.shape_cast %46 : vector<1x1x8x128xf32> to vector<8x128xf32>
    %48 = vector.shape_cast %45 : vector<8x128xf32> to vector<1x1x8x128xf32>
    tpu.vector_store %arg5[%c0_36, %c3_37, %c0_38, %c0_39], %48 {strides = array<i32>} : memref<1x4x8x128xf32, #tpu.memory_space<vmem>>, vector<1x1x8x128xf32>,
    return
  }
  func.func @transform_0(%arg0: i32, %arg1: i32, %arg2: i32) -> (i32, i32, i32) {
    %c1_i32 = arith.constant 1 : i32
    %0 = arith.muli %arg1, %c1_i32 : i32
    %1 = arith.addi %0, %arg2 : i32
    %c0_i32 = arith.constant 0 : i32
    %c0_i32_0 = arith.constant 0 : i32
    return %arg0, %1, %c0_i32 : i32, i32, i32
  }
  func.func @transform_1(%arg0: i32, %arg1: i32, %arg2: i32) -> (i32, i32, i32) {
    %c1_i32 = arith.constant 1 : i32
    %0 = arith.muli %arg1, %c1_i32 : i32
    %1 = arith.addi %0, %arg2 : i32
    %c0_i32 = arith.constant 0 : i32
    %c0_i32_0 = arith.constant 0 : i32
    return %arg0, %1, %c0_i32 : i32, i32, i32
  }
  func.func @transform_2(%arg0: i32, %arg1: i32, %arg2: i32) -> (i32, i32, i32, i32) {
    %c1_i32 = arith.constant 1 : i32
    %0 = arith.muli %arg0, %c1_i32 : i32
    %1 = arith.addi %0, %arg1 : i32
    %c0_i32 = arith.constant 0 : i32
    %c0_i32_0 = arith.constant 0 : i32
    %c0_i32_1 = arith.constant 0 : i32
    %c0_i32_2 = arith.constant 0 : i32
    return %1, %c0_i32, %c0_i32_0, %c0_i32_1 : i32, i32, i32, i32
  }
}

</mosaic_0001>

<bundles_post_ra>
// kernel: tpu_custom_call.1
= control target key start
LH: loop header
LB: loop body
LE: loop exit
PB: predicated region body
PF: predicated region fallthrough
CT: control target
= control target key end

     0   :  { %7 = vsyncpa [#allocation3], 0  ;;  %s841_s0 = inlined_call_operand.hbm [shape: f32[2,8,128], index: 0, kind: input, shape index: {}]   ;;  %s842_s1 = inlined_call_operand.hbm [shape: f32[2,8,128], index: 1, kind: input, shape index: {}]   ;;  %s843_s2 = inlined_call_operand.hbm [shape: f32[2,4,8,128], index: 2, kind: output, shape index: {}]  }
   0x1   :  { %9 = vsyncpa [#allocation3 + $0x1], 0 }
   0x2   :  { %10 = vsyncpa [#allocation6], 0 }
   0x3   :  { %12 = vsyncpa [#allocation6 + $0x1], 0 }
   0x4   :  { %13 = vsyncpa [#allocation4], 0 }
   0x5   :  { %15 = vsyncpa [#allocation4 + $0x1], 0  ;;  %s665_s9 = smov 0   ;;  %s667_s10 = smov 0  }
   0x6   :  { %s669_s11 = smov 0   ;;  %s671_s12 = smov 0  }
   0x7   :  { %s673_s13 = smov 0   ;;  %s675_s14 = smov 0  }
   0x8 LB: > { %s405_s15 = sadd.s32 4294967295, %s643_s14   ;;  %s406_s16 = sadd.s32 4294967294, %s643_s14   ;;  %s643_s14 = sphi %s675_s14, %s21_s14   ;;  %s639_s13 = sphi %s673_s13, %s855_s13   ;;  %s635_s12 = sphi %s671_s12, %s854_s12   ;;  %s631_s11 = sphi %s669_s11, %s853_s11   ;;  %s627_s10 = sphi %s667_s10, %s852_s10   ;;  %s623_s9 = sphi %s665_s9, %s851_s9  }
   0x9   : > { %s40_s17 = sadd.s32 1, %s639_s13  ;;  %s51_s18 = sadd.s32 1, %s631_s11 }
   0xa   : > { %p42_p0 = scmp.ge.s32.totalorder %s40_s17, 2  ;;  %p58_p1 = scmp.ne.s32.totalorder %s631_s11, %s627_s10 }
   0xb   : > { %p59_p2 = scmp.eq.s32.totalorder %s643_s14, 0  ;;  %p64_p3 = scmp.ne.s32.totalorder %s627_s10, %s623_s9 }
   0xc   : > { %s857_s17 = smov (%p42_p0, %s40_s17), 0  ;;  %p65_p5 = scmp.eq.s32.totalorder %s405_s15, 0 }
   0xd   : > { %p706_p4 = por %p59_p2, %p58_p1  ;;  %s46_s20 = ssub.s32 %s639_s13, %s857_s17 }
   0xe   : > { %p120_p6 = scmp.eq.s32.totalorder %s405_s15, 1  ;;  %p49_p7 = scmp.eq.s32.totalorder %s46_s20, 0 }
   0xf   : > { %p712_p8 = por %p65_p5, %p64_p3  ;;  %p126_p10 = scmp.eq.s32.totalorder %s406_s16, 1 }
  0x10   : > { %p716_p9 = por %p120_p6, %p58_p1  ;;  %p446_p13 = scmp.lt.s32.totalorder %s643_s14, 2 }
  0x11   : > { %s721_s23 = scalar_select %p49_p7, %s631_s11, %s51_s18  }
  0x12   : > { %p723_p11 = por %p126_p10, %p64_p3  ;;  %s730_s25 = sand.u32 1, %s631_s11  }
  0x13   : > { %s409_s26 = sshll.u32 %s730_s25, 3  ;;  %s410_s27 = sshll.u32 %s639_s13, 7 }
  0x14   : > { %s157_s30 = scalar_lea.hbm %s841_s0, %s410_s27  ;;  %s150_s3 = scalar_lea.vmem [#allocation2], %s409_s26 }
  0x15   : > { %s159_s4 = sshll.u32 %s150_s3, 4  ;;  %p739_p0 = pnand %p446_p13, %p706_p4  ;;  %s160_s4 = int_to_ptr.vmem [resolvable:$true] %s159_s4 }
  0x16   : > { %p413_p1 = scmp.ge.s32.totalorder %s643_s14, 1  ;;  %p184_p2 = scmp.lt.s32.totalorder %s643_s14, 3 }
  0x17   : > { %s147_s6 = scalar_lea.sflag [#allocation3], %s730_s25  ;;  %p505_p3 = pneg %p739_p0 }
  0x18   : > { %s516_s7 = scalar_lea.vmem %s160_s4, 128  ;;  %s645_s8 = smov [#allocation2]  }
  0x19   : > { %p517_p5 = scmp.ne.s32.totalorder %s160_s4, %s516_s7  ;;  %s521_s15 = sshll.u32 %s645_s8, 4  ;;  %s522_s15 = int_to_ptr.vmem [resolvable:$false] %s521_s15 }
  0x1a   : > { %s523_s16 = scalar_lea.vmem %s522_s15, 256  ;;  %p524_p4 = scmp.lt.s32.totalorder %s160_s4, %s522_s15 }
  0x1b   : > { %p519_p6 = pnand %p517_p5, %p505_p3  ;;  %p525_p10 = scmp.lt.s32.totalorder %s523_s16, %s516_s7 }
  0x1d   : > { %p520_p7 = pneg %p519_p6  ;;  %p526_p13 = por %p525_p10, %p524_p4 }
  0x1f   : > { %p527_p12 = pnand %p526_p13, %p520_p7 }
  0x21   : > { %530 = shalt.err (!%p527_p12)
}
  0x22   : > { %438 = dma.hbm_to_vmem [thread:$0]  (!%p739_p0), %s157_s30, 128, %s160_s4, %s147_s6  }
  0x23   : > { %p757_p5 = pnand %p413_p1, %p184_p2  ;;  %s177_s28 = scalar_lea.hbm %s842_s1, %s410_s27 }
  0x24   : > { %s170_s29 = scalar_lea.vmem [#allocation5], %s409_s26  ;;  %s167_s7 = scalar_lea.sflag [#allocation6], %s730_s25 }
  0x25   : > { %s179_s3 = sshll.u32 %s170_s29, 4  ;;  %s646_s30 = smov [#allocation5]   ;;  %s180_s3 = int_to_ptr.vmem [resolvable:$true] %s179_s3 }
  0x26   : > { %s544_s8 = scalar_lea.vmem %s180_s3, 128  ;;  %s549_s4 = sshll.u32 %s646_s30, 4  ;;  %s550_s4 = int_to_ptr.vmem [resolvable:$false] %s549_s4 }
  0x27   : > { %p545_p12 = scmp.ne.s32.totalorder %s180_s3, %s544_s8  ;;  %s551_s6 = scalar_lea.vmem %s550_s4, 256 }
  0x28   : > { %p552_p1 = scmp.lt.s32.totalorder %s180_s3, %s550_s4  ;;  %p553_p2 = scmp.lt.s32.totalorder %s551_s6, %s544_s8 }
  0x29   : > { %p547_p6 = pnand %p545_p12, %p505_p3 }
  0x2a   : > { %p554_p4 = por %p553_p2, %p552_p1 }
  0x2b   : > { %p548_p7 = pneg %p547_p6 }
  0x2d   : > { %p555_p10 = pnand %p554_p4, %p548_p7 }
  0x2f   : > { %558 = shalt.err (!%p555_p10)
}
  0x30   : > { %441 = dma.hbm_to_vmem [thread:$0]  (!%p739_p0), %s177_s28, 128, %s180_s3, %s167_s7  }
  0x31   : > { %188 = sbr.rel (%p757_p5) target bundleno = 113 (0x71), region = 28  ;;  %s773_s25 = sand.u32 (!%p757_p5), 1, %s627_s10  }
  0x32   : > { %s414_s26 = sshll.u32 (!%p757_p5), %s773_s25, 3  ;;  %s191_s27 = scalar_lea.sflag (!%p757_p5), [#allocation3], %s773_s25 }
  0x33   : > { %s194_s15 = scalar_lea.vmem (!%p757_p5), [#allocation2], %s414_s26 }
  0x36   : > { %610 = dma.done.wait (%p712_p8), %s191_s27, 128  }
  0x37   : > { %612 = vsyncadd (%p712_p8), %s191_s27, 4294967168  ;;  %s200_s5 = scalar_lea.sflag [#allocation6], %s773_s25  ;;  %s203_s16 = scalar_lea.vmem [#allocation5], %s414_s26 }
  0x38   : > { %614 = dma.done.wait (%p712_p8), %s200_s5, 128  }
  0x39   : > { %616 = vsyncadd (%p712_p8), %s200_s5, 4294967168  ;;  %s416_s18 = sshll.u32 %s773_s25, 5  ;;  %v240_v0 = vld [vmem:[%s194_s15] sm:$0xff]  ;;  %v241_v1 = vld [vmem:[%s203_s16] sm:$0xff]  ;;  %s428_s21 = sshll.u32 %s635_s12, 9 }
  0x3a   : > { %v242_v2 = vmul.f32 %v241_v1, %v240_v0  ;;  %v245_v3 = vand.u32 2147483647, %v240_v0  ;;  %s228_s19 = scalar_lea.vmem [#allocation7], %s416_s18  ;;  %v243_v10 = vmax.f32 %v240_v0, 0.0  ;;  %s791_s3 = scalar_lea.hbm %s843_s2, %s428_s21 }
  0x3b   : > { %420 = vst [vmem:[%s228_s19 + $0x10] sm:$0xff] %v240_v0  ;;  %422 = vst [vmem:[%s228_s19 + $0x18] sm:$0xff] %v241_v1  ;;  %s293_s20 = sshll.u32 %s228_s19, 4  ;;  %s279_s7 = scalar_lea.sflag [#allocation4], %s773_s25  ;;  %s793_s20 = int_to_ptr.vmem [resolvable:$true] %s293_s20 }
  0x3c   : > { %v246_v4 = vsub.f32 0.0, %v245_v3  ;;  %418 = vst [vmem:[%s228_s19 + $0x8] sm:$0xff] %v242_v2  ;;  %v244_v14 = vsub.f32 %v243_v10, %v242_v2  ;;  %s559_s8 = scalar_lea.vmem %s793_s20, 512  ;;  %s647_s12 = smov [#allocation7]  }
  0x3d   : > { %p560_p8 = scmp.ne.s32.totalorder %s793_s20, %s559_s8  ;;  %s563_s30 = sshll.u32 %s647_s12, 4  ;;  %s564_s30 = int_to_ptr.vmem [resolvable:$false] %s563_s30 }
  0x3e   : > { %v247_v5 = vmul.f32 1.442695, %v246_v4  ;;  %s565_s4 = scalar_lea.vmem %s564_s30, 1024  ;;  %p566_p13 = scmp.lt.s32.totalorder %s793_s20, %s564_s30 }
  0x3f   : > { %p561_p0 = pnand %p560_p8, %p716_p9  ;;  %p567_p5 = scmp.lt.s32.totalorder %s565_s4, %s559_s8 }
  0x40   : > { %499 = vpow2.f32 %v247_v5 }
  0x41   : > { %p562_p3 = pneg %p561_p0  ;;  %p568_p12 = por %p567_p5, %p566_p13 }
  0x43   : > { %p569_p6 = pnand %p568_p12, %p562_p3 }
  0x4d   : > { %v500_v6 = vpop.eup %499 }
  0x4e   : > { %v249_v7 = vadd.f32 1.0, %v500_v6  ;;  %v252_v8 = vmul.f32 -0.5, %v500_v6  ;;  %v255_v11 = vand.u32 2147483647, %v500_v6 }
  0x50   : > { %501 = vlog2.f32 %v249_v7  ;;  %v253_v9 = vadd.f32 1.0, %v252_v8  ;;  %vm256_vm0 = vcmp.lt.f32.partialorder %v255_v11, 0.0004427343 }
  0x52   : > { %v254_v12 = vmul.f32 %v500_v6, %v253_v9 }
  0x5d   : > { %v502_v13 = vpop.eup %501 }
  0x5e   : > { %v251_v15 = vmul.f32 0.6931472, %v502_v13 }
  0x60   : > { %v257_v16 = vsel %vm256_vm0, %v254_v12, %v251_v15 }
  0x61   : > { %v258_v17 = vadd.f32 %v257_v16, %v244_v14 }
  0x63   : > { %262 = vst [vmem:[%s228_s19] sm:$0xff] %v258_v17 }
  0x64   : > { %572 = shalt.err (!%p569_p6)
}
  0x65   : > { %s573_s6 = scalar_lea.hbm %s791_s3, 512  ;;  %s577_s15 = scalar_lea.hbm %s843_s2, 1024 }
  0x66   : > { %p574_p7 = scmp.ne.s32.totalorder %s791_s3, %s573_s6  ;;  %p578_p4 = scmp.lt.s32.totalorder %s791_s3, %s843_s2 }
  0x67   : > { %p579_p10 = scmp.lt.s32.totalorder %s577_s15, %s573_s6 }
  0x68   : > { %p575_p1 = pnand %p574_p7, %p716_p9 }
  0x69   : > { %p580_p8 = por %p579_p10, %p578_p4 }
  0x6a   : > { %p576_p2 = pneg %p575_p1 }
  0x6c   : > { %p581_p0 = pnand %p580_p8, %p576_p2 }
  0x6e   : > { %584 = shalt.err (!%p581_p0)
}
  0x6f   : > { %s648_s18 = smov 128   ;;  %s649_s19 = smov 8  }
  0x70   : > { %433 = dma.vmem_to_hbm [thread:$0]  (%p716_p9), %s793_s20, 512, %s791_s3, %s279_s7, %s648_s18, %s648_s18, %s649_s19  }
  0x71 PF: > { %s308_s21 = sand.u32 1, %s623_s9   ;;  %p850_p3 = scmp.ge.s32.totalorder %s643_s14, 2 }
  0x72   : > { %s309_s28 = scalar_lea.sflag [#allocation4], %s308_s21 }
  0x73   : > { %p443_p13 = pnand %p850_p3, %p723_p11 }
  0x75   : > { %p444_p5 = pneg %p443_p13 }
  0x77   : > { %618 = dma.done.wait (%p444_p5), %s309_s28, 512  }
  0x78   : > { %620 = vsyncadd (%p444_p5), %s309_s28, 4294966784  ;;  %s21_s14 = sadd.s32 1, %s643_s14   ;;  %s851_s9 = smov %s627_s10 }
  0x79   : > { %p18_p12 = scmp.ge.s32.totalorder %s21_s14, 4   ;;  %s852_s10 = smov %s631_s11 }
  0x7a   : > { %s853_s11 = smov %s721_s23  ;;  %s854_s12 = smov %s639_s13 }
  0x7b   : > { %s855_s13 = smov %s857_s17  ;;  %20 = sbr.rel (!%p18_p12) target bundleno = 8 (0x8), region = 93 }
  0x80   :  { %314 = vsyncpa [#allocation3], 1 }
  0x81   :  { %316 = vsyncpa [#allocation3 + $0x1], 1 }
  0x82   :  { %317 = vsyncpa [#allocation6], 1 }
  0x83   :  { %319 = vsyncpa [#allocation6 + $0x1], 1 }
  0x84   :  { %320 = vsyncpa [#allocation4], 1 }
  0x85   :  { %322 = vsyncpa [#allocation4 + $0x1], 1 }

</bundles_post_ra>
